<compile_context>
chip_gen: v5e
topology: v5e:2x2
jax: 0.10.0
libtpu: 0.0.40
codegen_flags: <defaults>
</compile_context>

<pallas_src>
import numpy as np
import jax
import jax.numpy as jnp
from jax.experimental import pallas as pl
from jax.experimental.pallas import tpu as pltpu


def critic_kernel(s_ref, a_ref, w1s_ref, w1a_ref, b1_ref, w2_ref, b2_ref,
                  w3_ref, b3_ref, q_ref):
    """One batch tile, feature-major: s_ref [Ds, TB], a_ref [Da, TB] -> q_ref [1, TB]."""
    # ---- Layer 1: fused concat as a split matmul (bf16 MXU, f32 accum) ----
    h1 = (jnp.dot(w1s_ref[...], s_ref[...], preferred_element_type=jnp.float32)
          + jnp.dot(w1a_ref[...], a_ref[...], preferred_element_type=jnp.float32)
          + b1_ref[...])                                    # [H, TB] + [H, 1]
    h1 = jnp.maximum(h1, 0.0)                               # f32 VPU (v5e-safe)

    # ---- Layer 2: bf16 MXU, f32 accum ----
    h2 = jnp.dot(w2_ref[...], h1.astype(jnp.bfloat16),
                 preferred_element_type=jnp.float32) + b2_ref[...]
    h2 = jnp.maximum(h2, 0.0)                               # [H, TB]

    # ---- Layer 3 (out_features == 1): VPU multiply + sublane reduce ----
    # Result is already lane-dense (batch on lanes) -> dense stores, no relayout.
    q = jnp.sum(h2 * w3_ref[...], axis=0, keepdims=True) + b3_ref[...]   # [1, TB]
    q_ref[...] = q.astype(q_ref.dtype)


def _round_up(x, m):
    return ((x + m - 1) // m) * m


def _critic_xla(s, a, params):
    """Plain-XLA path (also the numerics reference): mirrors the kernel's
    bf16-operand / f32-accumulation dtype flow."""
    w1s, w1a, b1, w2, b2, w3, b3 = params
    sb = s.astype(jnp.bfloat16)
    ab = a.astype(jnp.bfloat16)
    h1 = jnp.maximum(
        jnp.dot(sb, w1s.T, preferred_element_type=jnp.float32)
        + jnp.dot(ab, w1a.T, preferred_element_type=jnp.float32)
        + b1.reshape(1, -1), 0.0)
    h2 = jnp.maximum(
        jnp.dot(h1.astype(jnp.bfloat16), w2.T,
                preferred_element_type=jnp.float32) + b2.reshape(1, -1), 0.0)
    return jnp.dot(h2, w3) + b3.reshape(1, 1)               # w3 is [H, 1] f32


critic_ref = _critic_xla


def critic_forward(s, a, params, *, block_b=4096, min_pallas_batch=256):
    """s: [B, state_dim], a: [B, action_dim] -> q: [B, 1] (f32)."""
    w1s, w1a, b1, w2, b2, w3, b3 = params
    B, state_dim = s.shape
    action_dim = a.shape[1]

    # Tiny batches: kernel launch + pipeline overhead dwarfs the math -> XLA.
    if B < min_pallas_batch:
        return _critic_xla(s, a, params)

    # Batch tile (lane axis): as large as possible to amortize the ~0.35 us
    # fixed per-grid-step overhead, but keep >= 2 grid steps so the "parallel"
    # axis can shard over both TensorCores on v7x.  Multiple of 128 lanes.
    tb = max(128, min(block_b, _round_up(pl.cdiv(B, 2), 128)))
    tb = min(tb, _round_up(B, 128))
    grid = (pl.cdiv(B, tb),)

    # Stream activations feature-major in bf16 (cast + transpose fuse in XLA).
    s_t = s.astype(jnp.bfloat16).T                          # [Ds, B]
    a_t = a.astype(jnp.bfloat16).T                          # [Da, B]

    def act_spec(feat):
        return pl.BlockSpec((feat, tb), lambda i: (0, i))

    def resident(arr):  # constant index_map -> stays in VMEM across the grid
        return pl.BlockSpec(arr.shape, lambda i: (0, 0))

    out = pl.pallas_call(
        critic_kernel,
        out_shape=jax.ShapeDtypeStruct((1, B), jnp.float32),
        grid=grid,
        in_specs=[
            act_spec(state_dim),
            act_spec(action_dim),
            resident(w1s), resident(w1a), resident(b1),
            resident(w2), resident(b2),
            resident(w3), resident(b3),
        ],
        out_specs=pl.BlockSpec((1, tb), lambda i: (0, i)),
        compiler_params=pltpu.CompilerParams(
            dimension_semantics=("parallel",)),             # batch axis over TCs
    )(s_t, a_t, w1s, w1a, b1, w2, b2, w3, b3)
    return out.reshape(B, 1)


def init_critic_params(key, state_dim, action_dim, hidden_width, init_w=0.003):
    """Deterministic re-implementation of Critic.__init__/init_weights.

    fanin_init uses size[0] of the PyTorch weight (= out_features) as the
    fan-in; that quirk is replicated.  Weights are returned in the
    feature-major layout the kernel consumes (PyTorch's native (out, in)
    layout), with W1 pre-split into state/action halves, MXU operands in bf16,
    biases and W3 as f32 column vectors.
    """
    d_in = state_dim + action_dim
    H = hidden_width
    k1, k2, k3, kb1, kb2, kb3 = jax.random.split(key, 6)

    v1 = 1.0 / np.sqrt(H)   # fanin_init(size=(H, d_in)) -> 1/sqrt(size[0])
    v2 = 1.0 / np.sqrt(H)
    w1 = jax.random.uniform(k1, (H, d_in), jnp.float32, -v1, v1)
    w2 = jax.random.uniform(k2, (H, H), jnp.float32, -v2, v2)
    w3 = jax.random.uniform(k3, (1, H), jnp.float32, -init_w, init_w)

    # nn.Linear default bias init: U(-1/sqrt(in_features), 1/sqrt(in_features))
    bb1 = 1.0 / np.sqrt(d_in)
    bb2 = 1.0 / np.sqrt(H)
    bb3 = 1.0 / np.sqrt(H)
    b1 = jax.random.uniform(kb1, (H, 1), jnp.float32, -bb1, bb1)
    b2 = jax.random.uniform(kb2, (H, 1), jnp.float32, -bb2, bb2)
    b3 = jax.random.uniform(kb3, (1, 1), jnp.float32, -bb3, bb3)

    # Split W1 along the input dim (replaces torch.cat) and store MXU operands
    # in bf16 once, at init.
    w1s = w1[:, :state_dim].astype(jnp.bfloat16)            # [H, Ds]
    w1a = w1[:, state_dim:].astype(jnp.bfloat16)            # [H, Da]
    w2 = w2.astype(jnp.bfloat16)                            # [H, H]
    w3 = w3.T                                               # [H, 1] f32 column

    return (w1s, w1a, b1, w2, b2, w3, b3)


if __name__ == "__main__":
    state_dim = 12
    action_dim = 4
    hidden_width = 32
    batch = 256   # big enough to exercise the Pallas path (2 grid steps), still tiny data

    key = jax.random.PRNGKey(0)
    kp, ks, ka = jax.random.split(key, 3)

    params = init_critic_params(kp, state_dim, action_dim, hidden_width)
    s = jax.random.normal(ks, (batch, state_dim), jnp.float32)
    a = jax.random.normal(ka, (batch, action_dim), jnp.float32)

    # Pallas path.
    q = critic_forward(s, a, params)
    jax.block_until_ready(q)
    assert q.shape == (batch, 1)

    q_ref = critic_ref(s, a, params)
    np.testing.assert_allclose(np.asarray(q), np.asarray(q_ref),
                               rtol=5e-3, atol=2e-3)

    # Small-batch path (plain-XLA fallback).
    q_small = critic_forward(s[:8], a[:8], params)
    jax.block_until_ready(q_small)
    assert q_small.shape == (8, 1)
    np.testing.assert_allclose(np.asarray(q_small), np.asarray(q_ref[:8]),
                               rtol=5e-3, atol=2e-3)

    print("KERNEL_OK")
</pallas_src>

<mosaic_0001>
module attributes {stable_mosaic.version = 11 : i64} {
  func.func @critic_kernel(%arg0: i32, %arg1: memref<12x128xbf16, #tpu.memory_space<vmem>>, %arg2: memref<4x128xbf16, #tpu.memory_space<vmem>>, %arg3: memref<32x12xbf16, #tpu.memory_space<vmem>>, %arg4: memref<32x4xbf16, #tpu.memory_space<vmem>>, %arg5: memref<32x1xf32, #tpu.memory_space<vmem>>, %arg6: memref<32x32xbf16, #tpu.memory_space<vmem>>, %arg7: memref<32x1xf32, #tpu.memory_space<vmem>>, %arg8: memref<32x1xf32, #tpu.memory_space<vmem>>, %arg9: memref<1x1xf32, #tpu.memory_space<vmem>>, %arg10: memref<1x128xf32, #tpu.memory_space<vmem>>) attributes {dimension_semantics = [#tpu.dimension_semantics<parallel>], iteration_bounds = array<i64: 2>, scalar_prefetch = 0 : i64, scratch_operands = 0 : i64, tpu.core_type = #tpu.core_type<tc>, window_params = [{transform_indices = @transform_0, window_bounds = array<i64: 12, 128>}, {transform_indices = @transform_1, window_bounds = array<i64: 4, 128>}, {pipeline_mode = #tpu.pipeline_mode<synchronous>, transform_indices = @transform_2, window_bounds = array<i64: 32, 12>}, {pipeline_mode = #tpu.pipeline_mode<synchronous>, transform_indices = @transform_3, window_bounds = array<i64: 32, 4>}, {pipeline_mode = #tpu.pipeline_mode<synchronous>, transform_indices = @transform_4, window_bounds = array<i64: 32, 1>}, {pipeline_mode = #tpu.pipeline_mode<synchronous>, transform_indices = @transform_5, window_bounds = array<i64: 32, 32>}, {pipeline_mode = #tpu.pipeline_mode<synchronous>, transform_indices = @transform_6, window_bounds = array<i64: 32, 1>}, {pipeline_mode = #tpu.pipeline_mode<synchronous>, transform_indices = @transform_7, window_bounds = array<i64: 32, 1>}, {pipeline_mode = #tpu.pipeline_mode<synchronous>, transform_indices = @transform_8, window_bounds = array<i64: 1, 1>}, {transform_indices = @transform_9, window_bounds = array<i64: 1, 128>}]} {
    %c0 = arith.constant 0 : index
    %c0_0 = arith.constant 0 : index
    %0 = vector.load %arg3[%c0, %c0_0] : memref<32x12xbf16, #tpu.memory_space<vmem>>, vector<32x12xbf16>
    %c0_1 = arith.constant 0 : index
    %c0_2 = arith.constant 0 : index
    %1 = vector.load %arg1[%c0_1, %c0_2] : memref<12x128xbf16, #tpu.memory_space<vmem>>, vector<12x128xbf16>
    %cst = arith.constant dense<0.000000e+00> : vector<32x128xf32>
    %2 = tpu.matmul %0, %1, %cst {dimension_numbers = #tpu.dot_dimension_numbers<[1], [0], [0], [1], [0, 0, 1, 1], [], []>} : vector<32x12xbf16>, vector<12x128xbf16>, vector<32x128xf32> -> vector<32x128xf32>
    %c0_3 = arith.constant 0 : index
    %c0_4 = arith.constant 0 : index
    %3 = vector.load %arg4[%c0_3, %c0_4] : memref<32x4xbf16, #tpu.memory_space<vmem>>, vector<32x4xbf16>
    %c0_5 = arith.constant 0 : index
    %c0_6 = arith.constant 0 : index
    %4 = vector.load %arg2[%c0_5, %c0_6] : memref<4x128xbf16, #tpu.memory_space<vmem>>, vector<4x128xbf16>
    %cst_7 = arith.constant dense<0.000000e+00> : vector<32x128xf32>
    %5 = tpu.matmul %3, %4, %cst_7 {dimension_numbers = #tpu.dot_dimension_numbers<[1], [0], [0], [1], [0, 0, 1, 1], [], []>} : vector<32x4xbf16>, vector<4x128xbf16>, vector<32x128xf32> -> vector<32x128xf32>
    %6 = arith.addf %2, %5 : vector<32x128xf32>
    %c0_8 = arith.constant 0 : index
    %c0_9 = arith.constant 0 : index
    %7 = vector.load %arg5[%c0_8, %c0_9] : memref<32x1xf32, #tpu.memory_space<vmem>>, vector<32x1xf32>
    %8 = vector.broadcast %7 : vector<32x1xf32> to vector<32x128xf32>
    %9 = arith.addf %6, %8 : vector<32x128xf32>
    %cst_10 = arith.constant 0.000000e+00 : f32
    %10 = vector.broadcast %cst_10 : f32 to vector<32x128xf32>
    %11 = arith.maximumf %9, %10 : vector<32x128xf32>
    %c0_11 = arith.constant 0 : index
    %c0_12 = arith.constant 0 : index
    %12 = vector.load %arg6[%c0_11, %c0_12] : memref<32x32xbf16, #tpu.memory_space<vmem>>, vector<32x32xbf16>
    %13 = arith.truncf %11 : vector<32x128xf32> to vector<32x128xbf16>
    %cst_13 = arith.constant dense<0.000000e+00> : vector<32x128xf32>
    %14 = tpu.matmul %12, %13, %cst_13 {dimension_numbers = #tpu.dot_dimension_numbers<[1], [0], [0], [1], [0, 0, 1, 1], [], []>} : vector<32x32xbf16>, vector<32x128xbf16>, vector<32x128xf32> -> vector<32x128xf32>
    %c0_14 = arith.constant 0 : index
    %c0_15 = arith.constant 0 : index
    %15 = vector.load %arg7[%c0_14, %c0_15] : memref<32x1xf32, #tpu.memory_space<vmem>>, vector<32x1xf32>
    %16 = vector.broadcast %15 : vector<32x1xf32> to vector<32x128xf32>
    %17 = arith.addf %14, %16 : vector<32x128xf32>
    %cst_16 = arith.constant 0.000000e+00 : f32
    %18 = vector.broadcast %cst_16 : f32 to vector<32x128xf32>
    %19 = arith.maximumf %17, %18 : vector<32x128xf32>
    %c0_17 = arith.constant 0 : index
    %c0_18 = arith.constant 0 : index
    %20 = vector.load %arg8[%c0_17, %c0_18] : memref<32x1xf32, #tpu.memory_space<vmem>>, vector<32x1xf32>
    %21 = vector.broadcast %20 : vector<32x1xf32> to vector<32x128xf32>
    %22 = arith.mulf %19, %21 : vector<32x128xf32>
    %cst_19 = arith.constant dense<0.000000e+00> : vector<128xf32>
    %23 = vector.multi_reduction <add>, %22, %cst_19 [0] : vector<32x128xf32> to vector<128xf32>
    %24 = vector.shape_cast %23 : vector<128xf32> to vector<1x128xf32>
    %c0_20 = arith.constant 0 : index
    %c0_21 = arith.constant 0 : index
    %25 = vector.load %arg9[%c0_20, %c0_21] : memref<1x1xf32, #tpu.memory_space<vmem>>, vector<1x1xf32>
    %26 = vector.broadcast %25 : vector<1x1xf32> to vector<1x128xf32>
    %27 = arith.addf %24, %26 : vector<1x128xf32>
    %c0_22 = arith.constant 0 : index
    %c0_23 = arith.constant 0 : index
    %28 = vector.load %arg10[%c0_22, %c0_23] : memref<1x128xf32, #tpu.memory_space<vmem>>, vector<1x128xf32>
    tpu.vector_store %arg10[%c0_22, %c0_23], %27 {strides = array<i32>} : memref<1x128xf32, #tpu.memory_space<vmem>>, vector<1x128xf32>,
    return
  }
  func.func @transform_0(%arg0: i32) -> (i32, i32) {
    %c0_i32 = arith.constant 0 : i32
    %c0_i32_0 = arith.constant 0 : i32
    return %c0_i32, %arg0 : i32, i32
  }
  func.func @transform_1(%arg0: i32) -> (i32, i32) {
    %c0_i32 = arith.constant 0 : i32
    %c0_i32_0 = arith.constant 0 : i32
    return %c0_i32, %arg0 : i32, i32
  }
  func.func @transform_2(%arg0: i32) -> (i32, i32) {
    %c0_i32 = arith.constant 0 : i32
    %c0_i32_0 = arith.constant 0 : i32
    %c0_i32_1 = arith.constant 0 : i32
    return %c0_i32, %c0_i32_0 : i32, i32
  }
  func.func @transform_3(%arg0: i32) -> (i32, i32) {
    %c0_i32 = arith.constant 0 : i32
    %c0_i32_0 = arith.constant 0 : i32
    %c0_i32_1 = arith.constant 0 : i32
    return %c0_i32, %c0_i32_0 : i32, i32
  }
  func.func @transform_4(%arg0: i32) -> (i32, i32) {
    %c0_i32 = arith.constant 0 : i32
    %c0_i32_0 = arith.constant 0 : i32
    %c0_i32_1 = arith.constant 0 : i32
    return %c0_i32, %c0_i32_0 : i32, i32
  }
  func.func @transform_5(%arg0: i32) -> (i32, i32) {
    %c0_i32 = arith.constant 0 : i32
    %c0_i32_0 = arith.constant 0 : i32
    %c0_i32_1 = arith.constant 0 : i32
    return %c0_i32, %c0_i32_0 : i32, i32
  }
  func.func @transform_6(%arg0: i32) -> (i32, i32) {
    %c0_i32 = arith.constant 0 : i32
    %c0_i32_0 = arith.constant 0 : i32
    %c0_i32_1 = arith.constant 0 : i32
    return %c0_i32, %c0_i32_0 : i32, i32
  }
  func.func @transform_7(%arg0: i32) -> (i32, i32) {
    %c0_i32 = arith.constant 0 : i32
    %c0_i32_0 = arith.constant 0 : i32
    %c0_i32_1 = arith.constant 0 : i32
    return %c0_i32, %c0_i32_0 : i32, i32
  }
  func.func @transform_8(%arg0: i32) -> (i32, i32) {
    %c0_i32 = arith.constant 0 : i32
    %c0_i32_0 = arith.constant 0 : i32
    %c0_i32_1 = arith.constant 0 : i32
    return %c0_i32, %c0_i32_0 : i32, i32
  }
  func.func @transform_9(%arg0: i32) -> (i32, i32) {
    %c0_i32 = arith.constant 0 : i32
    %c0_i32_0 = arith.constant 0 : i32
    return %c0_i32, %arg0 : i32, i32
  }
}

</mosaic_0001>

<bundles_post_ra>
// kernel: tpu_custom_call.1
= control target key start
LH: loop header
LB: loop body
LE: loop exit
PB: predicated region body
PF: predicated region fallthrough
CT: control target
= control target key end

     0   :  { %s1099_s0 = inlined_call_operand.vmem [shape: bf16[12,256], index: 0, kind: input, shape index: {}]   ;;  %s1100_s1 = inlined_call_operand.vmem [shape: bf16[4,256], index: 1, kind: input, shape index: {}]   ;;  %s1101_s2 = inlined_call_operand.vmem [shape: bf16[32,12], index: 2, kind: input, shape index: {}]   ;;  %s1102_s3 = inlined_call_operand.vmem [shape: bf16[32,4], index: 3, kind: input, shape index: {}]   ;;  %s1103_s4 = inlined_call_operand.vmem [shape: f32[32,1], index: 4, kind: input, shape index: {}]   ;;  %s1104_s5 = inlined_call_operand.vmem [shape: bf16[32,32], index: 5, kind: input, shape index: {}]   ;;  %s1105_s6 = inlined_call_operand.vmem [shape: f32[32,1], index: 6, kind: input, shape index: {}]   ;;  %s1106_s7 = inlined_call_operand.vmem [shape: f32[32,1], index: 7, kind: input, shape index: {}]   ;;  %s1107_s8 = inlined_call_operand.<no memory space> [shape: f32[1,1], index: 8, kind: input, shape index: {}]   ;;  %s1108_s9 = inlined_call_operand.hbm [shape: f32[1,256], index: 9, kind: output, shape index: {}]  }
   0x1   :  { %v14_v0 = vstv %s1107_s8 }
   0x2   :  { %15 = vst [vmem:[#allocation2] sm:$0x1] %v14_v0 }
   0x3   :  { %16 = vsyncpa [#allocation5], 0 }
   0x4   :  { %18 = vsyncpa [#allocation5 + $0x1], 0  ;;  %s941_s11 = smov 0   ;;  %s943_s12 = smov 0  }
   0x5   :  { %s945_s13 = smov 0   ;;  %s947_s14 = smov 0  }
   0x6 LB: > { %s962_s8 = sadd.s32 4294967295, %s885_s14   ;;  %s727_s15 = sadd.s32 4294967294, %s885_s14   ;;  %s885_s14 = sphi %s947_s14, %s1114_s14   ;;  %s881_s13 = sphi %s945_s13, %s1113_s13   ;;  %s877_s12 = sphi %s943_s12, %s1112_s12   ;;  %s873_s11 = sphi %s941_s11, %s1111_s11  }
   0x7   : > { %s966_s16 = sadd.s32 1, %s885_s14   ;;  %s31_s17 = sadd.s32 1, %s881_s13 }
   0x8   : > { %s28_s18 = ssub.s32 %s885_s14, %s966_s16  ;;  %p38_p0 = scmp.ne.s32.totalorder %s881_s13, %s877_s12 }
   0x9   : > { %p29_p1 = scmp.eq.s32.totalorder %s28_s18, 0  ;;  %p39_p2 = scmp.eq.s32.totalorder %s885_s14, 0 }
   0xa   : > { %p241_p3 = scmp.eq.s32.totalorder %s962_s8, 1  ;;  %p246_p4 = scmp.ne.s32.totalorder %s877_s12, %s873_s11 }
   0xb   : > { %s978_s19 = scalar_select %p29_p1, %s881_s13, %s31_s17  }
   0xc   : > { %p40_p5 = por %p39_p2, %p38_p0  ;;  %p980_p6 = por %p241_p3, %p38_p0 }
   0xd   : > { %p247_p7 = scmp.eq.s32.totalorder %s727_s15, 1  ;;  %p729_p9 = scmp.ge.s32.totalorder %s885_s14, 2 }
   0xf   : > { %p984_p8 = por %p247_p7, %p246_p4  ;;  %284 = sbr.rel (%p729_p9) target bundleno = 26 (0x1a), region = 44 }
  0x14   : > { %287 = sbr.rel (!%p40_p5) target bundleno = 26 (0x1a), region = 48  ;;  %s289_s22 = sand.u32 (%p40_p5), 1, %s881_s13  }
  0x15   : > { %s731_s23 = sshll.u32 (%p40_p5), %s885_s14, 2  ;;  %s730_s24 = sshll.u32 (%p40_p5), %s289_s22, 3 }
  0x16   : > { %s293_s27 = scalar_lea.vmem (%p40_p5), %s1099_s0, %s731_s23  ;;  %s291_s28 = scalar_lea.vmem (%p40_p5), [#allocation3], %s730_s24 }
  0x17   : > { %v310_v1 = vld [vmem:[%s293_s27] sm:$0xf] (%p40_p5)  ;;  %v312_v2 = vld [vmem:[%s293_s27 + $0x8] sm:$0xf] (%p40_p5) }
  0x18   : > { %311 = vst [vmem:[%s291_s28] sm:$0xf] (%p40_p5), %v310_v1 }
  0x19   : > { %313 = vst [vmem:[%s291_s28 + $0x4] sm:$0xf] %v312_v2 }
  0x1a PF: > { %p732_p10 = scmp.ge.s32.totalorder %s885_s14, 1  ;;  %p347_p11 = scmp.lt.s32.totalorder %s885_s14, 3 }
  0x1c   : > { %p348_p12 = pnand %p732_p10, %p347_p11 }
  0x1d   : > { %s999_s29 = sand.u32 (!%p348_p12), 1, %s877_s12   ;;  %p392_p13 = scmp.lt.s32.totalorder (!%p348_p12), %s962_s8, 1 }
  0x1e   : > { %351 = sbr.rel (%p348_p12) target bundleno = 378 (0x17a), region = 93  ;;  %s733_s15 = sshll.u32 (!%p348_p12), %s999_s29, 3 }
  0x1f   : > { %s356_s22 = scalar_lea.vmem (!%p348_p12), [#allocation3], %s733_s15  ;;  %s650_s26 = scalar_lea.hbm (!%p348_p12), %s1108_s9, %s962_s8 }
  0x20   : > { %s654_s30 = sshll.u32 (!%p348_p12), %s650_s26, 4  ;;  %s642_s10 = scalar_lea.sflag (!%p348_p12), [#allocation5], %s999_s29  ;;  %s655_s30 = int_to_ptr.hbm [resolvable:$true] %s654_s30 }
  0x21   : > { %s837_s15 = sshra.s32 (!%p348_p12), %s655_s30, 4  ;;  %s838_s15 = int_to_ptr.hbm [resolvable:$true] %s837_s15 }
  0x22   : > { %s839_s17 = scalar_lea.hbm (!%p348_p12), %s838_s15, 1  ;;  %p844_p3 = scmp.lt.s32.totalorder (!%p348_p12), %s838_s15, %s1108_s9 }
  0x23   : > { %v495_v3 = vld [vmem:[%s1103_s4 + $0x10] sm:$0xff]  ;;  %v887_v4 = vmov 0   ;;  %v493_v5 = vld [vmem:[%s1103_s4] sm:$0xff]  ;;  %vm470_vm0 = vcmask 1045504   ;;  %s393_s23 = scalar_select %p392_p13, %s962_s8, 1  ;;  %vm425_vm1 = vcmask 1041408  }
  0x24   : > { %820 = vset.pattern.permute.xlu0 %v887_v4  ;;  %821 = vset.pattern.permute.xlu1 %v887_v4  ;;  %v755_v6 = vld [vmem:[%s356_s22] sm:$0xf]  ;;  %v773_v7 = vld [vmem:[%s356_s22] sm:$0x30]  ;;  %vm463_vm2 = vcmask 97280   ;;  %v496_v12 = vld [vmem:[%s1103_s4 + $0x18] sm:$0xff]  ;;  %p840_p0 = scmp.ne.s32.totalorder %s838_s15, %s839_s17 }
  0x25   : > { %509 = vperm.xlu0 %820, %v495_v3   ;;  %822 = vset.pattern.permute.xlu2 %v887_v4  ;;  %v756_v8 = vor.u32 %v773_v7, %v755_v6  ;;  %s734_s24 = sshll.u32 %s393_s23, 1  ;;  %v771_v10 = vld [vmem:[%s1101_s2] sm:$0xff]  ;;  %v494_v15 = vld [vmem:[%s1103_s4 + $0x8] sm:$0xff]  ;;  %vm418_vm3 = vcmask 31744   ;;  %v533_v16 = vld [vmem:[%s1105_s6 + $0x10] sm:$0xff]  ;;  %vm565_vm4 = vcmask 261120  }
  0x26   : > { %499 = vperm.xlu1 %821, %v493_v5   ;;  %s395_s27 = scalar_lea.vmem %s1100_s1, %s734_s24  ;;  %v774_v14 = vld [vmem:[%s1102_s3] sm:$0xff]  ;;  %v534_v17 = vld [vmem:[%s1105_s6 + $0x18] sm:$0xff]  ;;  %v772_v18 = vld [vmem:[%s1101_s2 + $0x8] sm:$0xff]  ;;  %p841_p1 = pnand %p840_p0, %p980_p6 }
  0x27   : > { %v472_v9 = vsel %vm470_vm0, %v756_v8, 0  ;;  %v407_v11 = vld [vmem:[%s395_s27] sm:$0x3]  ;;  %v596_v19 = vld [vmem:[%s1106_s7 + $0x8] sm:$0xff]  ;;  %v597_v21 = vld [vmem:[%s1106_s7 + $0x10] sm:$0xff]  ;;  %s391_s27 = scalar_lea.vmem [#allocation4], %s999_s29 }
  0x28   : > { %481 = vmatpush.bf16.msra.mxu1 %v472_v9  ;;  %v427_v13 = vsel %vm425_vm1, %v407_v11, 0  ;;  %v775_v20 = vld [vmem:[%s1102_s3 + $0x8] sm:$0xff]  ;;  %v632_v22 = vld [vmem:[#allocation2] sm:$0x1]  ;;  %v598_v50 = vld [vmem:[%s1106_s7 + $0x18] sm:$0xff]  ;;  %s652_s28 = sshll.u32 %s391_s27, 4  ;;  %p842_p2 = pneg %p841_p1  ;;  %s653_s28 = int_to_ptr.vmem [resolvable:$true] %s652_s28 }
  0x29   : > { %436 = vmatpush.bf16.msra.mxu0 %v427_v13  ;;  %v531_v27 = vld [vmem:[%s1105_s6] sm:$0xff]  ;;  %v532_v29 = vld [vmem:[%s1105_s6 + $0x8] sm:$0xff]  ;;  %s843_s22 = scalar_lea.hbm %s1108_s9, 2 }
  0x2a   : > { %537 = vperm.xlu2 %822, %v531_v27   ;;  %v595_v35 = vld [vmem:[%s1106_s7] sm:$0xff]  ;;  %v777_v54 = vld [vmem:[%s1104_s5 + $0x8] sm:$0xff]  ;;  %p845_p4 = scmp.lt.s32.totalorder %s843_s22, %s839_s17 }
  0x2b   : > { %757 = vmatmul.msk.bf16.vlgmr.msra.gmra.mxu1 %vm463_vm2, %v771_v10  ;;  %v776_v53 = vld [vmem:[%s1104_s5] sm:$0xff] }
  0x2c   : > { %743 = vmatmul.msk.bf16.vlgmr.msra.gmra.mxu0 %vm418_vm3, %v774_v14  ;;  %p846_p5 = por %p845_p4, %p844_p3 }
  0x2d   : > { %514 = vperm.xlu0 %820, %v496_v12  }
  0x2e   : > { %504 = vperm.xlu1 %821, %v494_v15   ;;  %p847_p7 = pnand %p846_p5, %p842_p2 }
  0x32   : > { %542 = vperm.xlu2 %822, %v532_v29  }
  0x35   : > { %547 = vperm.xlu0 %820, %v533_v16  }
  0x36   : > { %552 = vperm.xlu1 %821, %v534_v17  }
  0x3a   : > { %601 = vperm.xlu2 %822, %v595_v35  }
  0x3b   : > { %758 = vmatmul.msk.bf16.gmra.mxu1 %vm463_vm2, %v772_v18 }
  0x3c   : > { %744 = vmatmul.msk.bf16.gmra.mxu0 %vm418_vm3, %v775_v20 }
  0x3d   : > { %606 = vperm.xlu0 %820, %v596_v19  }
  0x3e   : > { %611 = vperm.xlu1 %821, %v597_v21  }
  0x42   : > { %616 = vperm.xlu2 %822, %v598_v50  }
  0x45   : > { %635 = vperm.xlu0 %820, %v632_v22  }
  0x84   : > { %v538_v55 = vpop.permute.xlu2 %537 }
  0x8c   : > { %v543_v56 = vpop.permute.xlu2 %542 }
  0x94   : > { %v602_v62 = vpop.permute.xlu2 %601 }
  0x97   : > { %v510_v30 = vpop.permute.xlu0 %509 }
  0x98   : > { %v500_v31 = vpop.permute.xlu1 %499 }
  0x9c   : > { %v617_v14 = vpop.permute.xlu2 %616 }
  0x9f   : > { %v515_v41 = vpop.permute.xlu0 %514 }
  0xa0   : > { %v505_v42 = vpop.permute.xlu1 %504 }
  0xa7   : > { %v548_v59 = vpop.permute.xlu0 %547 }
  0xa8   : > { %v483_v23 = vpop.f32.mrf.mxu1  ;;  %v553_v60 = vpop.permute.xlu1 %552 }
  0xa9   : > { %v438_v24 = vpop.f32.mrf.mxu0 }
  0xaa   : > { %v484_v38 = vadd.f32 %v483_v23, %v438_v24 }
  0xac   : > { %v517_v45 = vadd.f32 %v500_v31, %v484_v38 }
  0xae   : > { %v521_v51 = vmax.f32 %v517_v45, 0.0 }
  0xaf   : > { %v607_v7 = vpop.permute.xlu0 %606 }
  0xb0   : > { %v485_v25 = vpop.f32.mrf.mxu1  ;;  %v612_v11 = vpop.permute.xlu1 %611 }
  0xb1   : > { %v440_v26 = vpop.f32.mrf.mxu0 }
  0xb2   : > { %v486_v36 = vadd.f32 %v485_v25, %v440_v26 }
  0xb4   : > { %v518_v43 = vadd.f32 %v505_v42, %v486_v36 }
  0xb6   : > { %v522_v48 = vmax.f32 %v518_v43, 0.0 }
  0xb7   : > { %v636_v22 = vpop.permute.xlu0 %635 }
  0xb8   : > { %v488_v28 = vpop.f32.mrf.mxu1  ;;  %v529_v52 = vpack.c.bf16 %v522_v48, %v521_v51  ;;  %v638_v24 = vperm.slane %v636_v22, 0 }
  0xb9   : > { %v443_v32 = vpop.f32.mrf.mxu0 }
  0xba   : > { %v489_v33 = vadd.f32 %v488_v28, %v443_v32 }
  0xbc   : > { %v519_v39 = vadd.f32 %v510_v30, %v489_v33 }
  0xbe   : > { %v523_v46 = vmax.f32 %v519_v39, 0.0 }
  0xc0   : > { %v490_v34 = vpop.f32.mrf.mxu1 }
  0xc1   : > { %v445_v37 = vpop.f32.mrf.mxu0 }
  0xc2   : > { %v491_v40 = vadd.f32 %v490_v34, %v445_v37 }
  0xc4   : > { %v520_v44 = vadd.f32 %v515_v41, %v491_v40 }
  0xc6   : > { %v524_v47 = vmax.f32 %v520_v44, 0.0 }
  0xc8   : > { %v530_v49 = vpack.c.bf16 %v524_v47, %v523_v46 }
  0xca   : > { %578 = vmatpush.bf16.msra.mxu2 %v530_v49  ;;  %778 = vmatpush.bf16.msra.mxu3 %v530_v49 }
  0xce   : > { %579 = vmatpush.bf16.msra.mxu2 %v529_v52  ;;  %779 = vmatpush.bf16.msra.mxu3 %v529_v52 }
  0xd1   : > { %767 = vmatmul.msk.bf16.vlgmr.msra.gmra.mxu2 %vm565_vm4, %v776_v53  ;;  %768 = vmatmul.msk.bf16.vlgmr.msra.gmra.mxu3 %vm565_vm4, %v777_v54 }
 0x154   : > { %v581_v57 = vpop.f32.mrf.mxu2  ;;  %v586_v58 = vpop.f32.mrf.mxu3 }
 0x155   : > { %v582_v61 = vadd.f32 %v581_v57, %v538_v55  ;;  %v587_v63 = vadd.f32 %v586_v58, %v548_v59 }
 0x157   : > { %v591_v2 = vmax.f32 %v582_v61, 0.0  ;;  %v593_v5 = vmax.f32 %v587_v63, 0.0 }
 0x159   : > { %v619_v8 = vmul.f32 %v602_v62, %v591_v2  ;;  %v621_v12 = vmul.f32 %v612_v11, %v593_v5 }
 0x15c   : > { %v583_v0 = vpop.f32.mrf.mxu2  ;;  %v588_v1 = vpop.f32.mrf.mxu3 }
 0x15d   : > { %v584_v3 = vadd.f32 %v583_v0, %v543_v56  ;;  %v589_v4 = vadd.f32 %v588_v1, %v553_v60 }
 0x15f   : > { %v592_v6 = vmax.f32 %v584_v3, 0.0  ;;  %v594_v10 = vmax.f32 %v589_v4, 0.0 }
 0x161   : > { %v620_v9 = vmul.f32 %v607_v7, %v592_v6  ;;  %v622_v15 = vmul.f32 %v617_v14, %v594_v10 }
 0x163   : > { %v623_v13 = vadd.f32 %v620_v9, %v619_v8 }
 0x165   : > { %v624_v16 = vadd.f32 %v623_v13, %v621_v12 }
 0x167   : > { %v625_v17 = vadd.f32 %v624_v16, %v622_v15 }
 0x169   : > { %v626_v18 = vrot.slane %v625_v17, 4 }
 0x16b   : > { %v627_v19 = vadd.f32 %v626_v18, %v625_v17 }
 0x16d   : > { %v628_v20 = vrot.slane %v627_v19, 2 }
 0x16f   : > { %v629_v21 = vadd.f32 %v628_v20, %v627_v19 }
 0x171   : > { %v630_v23 = vrot.slane %v629_v21, 1 }
 0x173   : > { %v631_v25 = vadd.f32 %v630_v23, %v629_v21 }
 0x175   : > { %v639_v26 = vadd.f32 %v638_v24, %v631_v25 }
 0x177   : > { %640 = vst [vmem:[%s391_s27] sm:$0x1] %v639_v26 }
 0x178   : > { %850 = shalt.err (!%p847_p7)
}
 0x179   : > { %780 = dma.vmem_to_hbm [thread:$0]  (%p980_p6), %s653_s28, 16, %s655_s30, %s642_s10  }
 0x17a PF: > { %s666_s29 = sand.u32 1, %s873_s11   ;;  %p783_p10 = pnand %p729_p9, %p984_p8 }
 0x17b   : > { %s667_s25 = scalar_lea.sflag [#allocation5], %s666_s29 }
 0x17c   : > { %p784_p11 = pneg %p783_p10 }
 0x17e   : > { %868 = dma.done.wait (%p784_p11), %s667_s25, 16  }
 0x17f   : > { %870 = vsyncadd (%p784_p11), %s667_s25, 4294967280  ;;  %p21_p12 = scmp.ge.s32.totalorder %s966_s16, 4   ;;  %s1111_s11 = smov %s877_s12 }
 0x180   : > { %s1112_s12 = smov %s881_s13  ;;  %s1113_s13 = smov %s978_s19 }
 0x181   : > { %s1114_s14 = smov %s966_s16  ;;  %23 = sbr.rel (!%p21_p12) target bundleno = 6 (0x6), region = 140 }
 0x186   :  { %672 = vsyncpa [#allocation5], 1 }
 0x187   :  { %674 = vsyncpa [#allocation5 + $0x1], 1 }

</bundles_post_ra>
